<compile_context>
chip_gen: v7x
topology: tpu7x:2x2x1
jax: 0.10.0
libtpu: 0.0.40
codegen_flags: <defaults>
</compile_context>

<pallas_src>
import numpy as np
import jax
import jax.numpy as jnp
from jax import lax
from jax.experimental import pallas as pl
from jax.experimental.pallas import tpu as pltpu


# ---------------------------------------------------------------------------
# Fused kernel (one batch sample per grid step, everything vreg-resident).
# ---------------------------------------------------------------------------
def encoder_fused_kernel(x_ref, w1_ref, b1_ref, w2_ref, b2_ref, w3_ref, b3_ref,
                         mu_ref, l_ref, sigma_ref):
    T = l_ref.shape[0]

    # Merged MLP chain: (1, T*Dx) -> (1, 3H) -> (1, 3H) -> (1, 2T + T*T).
    h = jnp.maximum(
        jnp.dot(x_ref[...], w1_ref[...], preferred_element_type=jnp.float32)
        + b1_ref[...], 0.0)
    h = jnp.maximum(
        jnp.dot(h, w2_ref[...], preferred_element_type=jnp.float32)
        + b2_ref[...], 0.0)
    y = (jnp.dot(h, w3_ref[...], preferred_element_type=jnp.float32)
         + b3_ref[...])                                    # (1, 2T + T*T)

    # Output slab layout along lanes: [ mu (T) | d_raw (T) | M rows (T*T) ].
    mu_ref[...] = y[:, 0:T]                                # single store
    d = jnp.exp(y[:, T:2 * T])                             # (1, T)

    row = lax.broadcasted_iota(jnp.int32, (T, T), 0)
    col = lax.broadcasted_iota(jnp.int32, (T, T), 1)

    # Lane->sublane relayout of the flat M vector, kept entirely in registers
    # (value slices + selects + adds; no scratch reads, no per-row stores).
    m = jnp.zeros((T, T), jnp.float32)
    for i in range(T):
        m_row = y[:, 2 * T + i * T: 2 * T + (i + 1) * T]   # (1, T) value slice
        m = m + jnp.where(row == i, m_row, 0.0)            # place on sublane i

    # Vectorized Cholesky-factor assembly:
    #   L[i, j] = M[i, j]  for j < i,   exp(d)[i]  for j == i,   0 for j > i.
    L = jnp.where(col < row, m, 0.0) + jnp.where(col == row, d, 0.0)
    l_ref[...] = L                                         # one whole-tile store

    # Sigma = L @ L^T from the in-register L (contract trailing dims of both
    # operands; no materialized transpose, no reload of l_ref).
    sigma_ref[...] = lax.dot_general(
        L, L, dimension_numbers=(((1,), (1,)), ((), ())),
        preferred_element_type=jnp.float32)


# ---------------------------------------------------------------------------
# Parameter construction (deterministic, synthetic) + host-side packing.
# Linear layers stored as (in_dim, out_dim) weights and (1, out_dim) bias.
# ---------------------------------------------------------------------------
def make_mlp_params(key, input_dim, output_dim, n_layers=3, inter_dim=32):
    params = []
    dims_in = [input_dim] + [inter_dim] * (n_layers - 1)
    dims_out = [inter_dim] * (n_layers - 1) + [output_dim]
    for i in range(n_layers):
        key, kw, kb = jax.random.split(key, 3)
        w = jax.random.normal(kw, (dims_in[i], dims_out[i]), jnp.float32) / jnp.sqrt(
            jnp.float32(dims_in[i]))
        b = 0.01 * jax.random.normal(kb, (1, dims_out[i]), jnp.float32)
        params += [w, b]
    return params, key


def _block_diag3(a, b, c):
    ra, ca = a.shape
    rb, cb = b.shape
    rc, cc = c.shape
    out = jnp.zeros((ra + rb + rc, ca + cb + cc), a.dtype)
    out = out.at[:ra, :ca].set(a)
    out = out.at[ra:ra + rb, ca:ca + cb].set(b)
    out = out.at[ra + rb:, ca + cb:].set(c)
    return out


def pack_encoder_params(mean_p, diag_p, full_p):
    """Merge the three 3-layer MLPs into one block-diagonal matmul chain."""
    mw1, mb1, mw2, mb2, mw3, mb3 = mean_p
    dw1, db1, dw2, db2, dw3, db3 = diag_p
    fw1, fb1, fw2, fb2, fw3, fb3 = full_p
    W1 = jnp.concatenate([mw1, dw1, fw1], axis=1)            # (T*Dx, 3H)
    B1 = jnp.concatenate([mb1, db1, fb1], axis=1)            # (1, 3H)
    W2 = _block_diag3(mw2, dw2, fw2)                         # (3H, 3H)
    B2 = jnp.concatenate([mb2, db2, fb2], axis=1)            # (1, 3H)
    W3 = _block_diag3(mw3, dw3, fw3)                         # (3H, 2T + T*T)
    B3 = jnp.concatenate([mb3, db3, fb3], axis=1)            # (1, 2T + T*T)
    return W1, B1, W2, B2, W3, B3


# ---------------------------------------------------------------------------
# Encoder wrapper.
# ---------------------------------------------------------------------------
def encoder_forward(x, packed_params, sequence_length, x_dimension):
    """x: (B, T, Dx). Returns (mu (B,T), Sigma (B,T,T), L (B,T,T))."""
    B = x.shape[0]
    T = sequence_length
    Dx = x_dimension
    W1, B1, W2, B2, W3, B3 = packed_params

    # Leading batch axis becomes the grid axis; per-step blocks are 2-D.
    x3 = x.reshape(B, 1, T * Dx)

    mu3, L, sigma = pl.pallas_call(
        encoder_fused_kernel,
        out_shape=(
            jax.ShapeDtypeStruct((B, 1, T), jnp.float32),
            jax.ShapeDtypeStruct((B, T, T), jnp.float32),
            jax.ShapeDtypeStruct((B, T, T), jnp.float32),
        ),
        grid_spec=pltpu.PrefetchScalarGridSpec(
            num_scalar_prefetch=0,
            grid=(B,),
            in_specs=[
                pl.BlockSpec((None, 1, T * Dx), lambda b: (b, 0, 0)),
                pl.BlockSpec(W1.shape, lambda b: (0, 0)),
                pl.BlockSpec(B1.shape, lambda b: (0, 0)),
                pl.BlockSpec(W2.shape, lambda b: (0, 0)),
                pl.BlockSpec(B2.shape, lambda b: (0, 0)),
                pl.BlockSpec(W3.shape, lambda b: (0, 0)),
                pl.BlockSpec(B3.shape, lambda b: (0, 0)),
            ],
            out_specs=(
                pl.BlockSpec((None, 1, T), lambda b: (b, 0, 0)),
                pl.BlockSpec((None, T, T), lambda b: (b, 0, 0)),
                pl.BlockSpec((None, T, T), lambda b: (b, 0, 0)),
            ),
        ),
        compiler_params=pltpu.CompilerParams(
            dimension_semantics=("parallel",)),
    )(x3, W1, B1, W2, B2, W3, B3)

    mu = mu3.reshape(B, T)      # free wrapper-side layout plumbing
    return mu, sigma, L


# ---------------------------------------------------------------------------
# Pure-JAX reference (mirrors the PyTorch forward) for validation.
# ---------------------------------------------------------------------------
def reference_forward(x, unpacked_params, T, Dx):
    B = x.shape[0]
    xf = x.reshape(B, T * Dx)

    def mlp(xf, p):
        w1, b1, w2, b2, w3, b3 = p
        h = jnp.maximum(xf @ w1 + b1, 0.0)
        h = jnp.maximum(h @ w2 + b2, 0.0)
        return h @ w3 + b3

    mean_p, diag_p, full_p = unpacked_params
    mu = mlp(xf, mean_p)
    D = jnp.exp(mlp(xf, diag_p))
    M = mlp(xf, full_p).reshape(B, T, T)
    idx = jnp.arange(T)
    M = M.at[:, idx, idx].set(0.0)
    L = jax.vmap(jnp.diag)(D) + M
    L = jnp.tril(L)
    sigma = jnp.einsum("bij,bkj->bik", L, L)
    return mu, sigma, L


if __name__ == "__main__":
    # Small shapes consistent with the module: batch=2, seq=8, x_dim=4,
    # hidden (inter_dim)=32, n_layers=3, z_dimension=1.
    B, T, Dx, INTER, NLAYERS = 2, 8, 4, 32, 3

    key = jax.random.PRNGKey(0)
    key, kx = jax.random.split(key)
    x = jax.random.normal(kx, (B, T, Dx), jnp.float32)

    mean_p, key = make_mlp_params(key, T * Dx, T, NLAYERS, INTER)
    diag_p, key = make_mlp_params(key, T * Dx, T, NLAYERS, INTER)
    full_p, key = make_mlp_params(key, T * Dx, T * T, NLAYERS, INTER)
    packed = pack_encoder_params(mean_p, diag_p, full_p)

    mu, sigma, L = encoder_forward(x, packed, T, Dx)
    jax.block_until_ready((mu, sigma, L))

    mu_r, sigma_r, L_r = reference_forward(x, (mean_p, diag_p, full_p), T, Dx)
    np.testing.assert_allclose(np.asarray(mu), np.asarray(mu_r), rtol=1e-5, atol=1e-5)
    np.testing.assert_allclose(np.asarray(L), np.asarray(L_r), rtol=1e-5, atol=1e-5)
    np.testing.assert_allclose(np.asarray(sigma), np.asarray(sigma_r), rtol=1e-4, atol=1e-4)

    print("KERNEL_OK")
</pallas_src>

<mosaic_0001>
module attributes {stable_mosaic.version = 11 : i64} {
  func.func @encoder_fused_kernel(%arg0: i32, %arg1: memref<1x1x32xf32, #tpu.memory_space<vmem>>, %arg2: memref<32x96xf32, #tpu.memory_space<vmem>>, %arg3: memref<1x96xf32, #tpu.memory_space<vmem>>, %arg4: memref<96x96xf32, #tpu.memory_space<vmem>>, %arg5: memref<1x96xf32, #tpu.memory_space<vmem>>, %arg6: memref<96x80xf32, #tpu.memory_space<vmem>>, %arg7: memref<1x80xf32, #tpu.memory_space<vmem>>, %arg8: memref<1x1x8xf32, #tpu.memory_space<vmem>>, %arg9: memref<1x8x8xf32, #tpu.memory_space<vmem>>, %arg10: memref<1x8x8xf32, #tpu.memory_space<vmem>>) attributes {dimension_semantics = [#tpu.dimension_semantics<parallel>], iteration_bounds = array<i64: 2>, scalar_prefetch = 0 : i64, scratch_operands = 0 : i64, tpu.core_type = #tpu.core_type<tc>, window_params = [{transform_indices = @transform_0, window_bounds = array<i64: 1, 1, 32>}, {pipeline_mode = #tpu.pipeline_mode<synchronous>, transform_indices = @transform_1, window_bounds = array<i64: 32, 96>}, {pipeline_mode = #tpu.pipeline_mode<synchronous>, transform_indices = @transform_2, window_bounds = array<i64: 1, 96>}, {pipeline_mode = #tpu.pipeline_mode<synchronous>, transform_indices = @transform_3, window_bounds = array<i64: 96, 96>}, {pipeline_mode = #tpu.pipeline_mode<synchronous>, transform_indices = @transform_4, window_bounds = array<i64: 1, 96>}, {pipeline_mode = #tpu.pipeline_mode<synchronous>, transform_indices = @transform_5, window_bounds = array<i64: 96, 80>}, {pipeline_mode = #tpu.pipeline_mode<synchronous>, transform_indices = @transform_6, window_bounds = array<i64: 1, 80>}, {transform_indices = @transform_7, window_bounds = array<i64: 1, 1, 8>}, {transform_indices = @transform_8, window_bounds = array<i64: 1, 8, 8>}, {transform_indices = @transform_9, window_bounds = array<i64: 1, 8, 8>}]} {
    %c0 = arith.constant 0 : index
    %c0_0 = arith.constant 0 : index
    %c0_1 = arith.constant 0 : index
    %0 = vector.load %arg1[%c0, %c0_0, %c0_1] : memref<1x1x32xf32, #tpu.memory_space<vmem>>, vector<1x1x32xf32>
    %1 = vector.shape_cast %0 : vector<1x1x32xf32> to vector<1x32xf32>
    %c0_2 = arith.constant 0 : index
    %c0_3 = arith.constant 0 : index
    %2 = vector.load %arg2[%c0_2, %c0_3] : memref<32x96xf32, #tpu.memory_space<vmem>>, vector<32x96xf32>
    %cst = arith.constant dense<0.000000e+00> : vector<1x96xf32>
    %3 = tpu.matmul %1, %2, %cst {dimension_numbers = #tpu.dot_dimension_numbers<[1], [0], [0], [1], [0, 0, 1, 1], [], []>} : vector<1x32xf32>, vector<32x96xf32>, vector<1x96xf32> -> vector<1x96xf32>
    %c0_4 = arith.constant 0 : index
    %c0_5 = arith.constant 0 : index
    %4 = vector.load %arg3[%c0_4, %c0_5] : memref<1x96xf32, #tpu.memory_space<vmem>>, vector<1x96xf32>
    %5 = arith.addf %3, %4 : vector<1x96xf32>
    %cst_6 = arith.constant 0.000000e+00 : f32
    %6 = vector.broadcast %cst_6 : f32 to vector<1x96xf32>
    %7 = arith.maximumf %5, %6 : vector<1x96xf32>
    %c0_7 = arith.constant 0 : index
    %c0_8 = arith.constant 0 : index
    %8 = vector.load %arg4[%c0_7, %c0_8] : memref<96x96xf32, #tpu.memory_space<vmem>>, vector<96x96xf32>
    %cst_9 = arith.constant dense<0.000000e+00> : vector<1x96xf32>
    %9 = tpu.matmul %7, %8, %cst_9 {dimension_numbers = #tpu.dot_dimension_numbers<[1], [0], [0], [1], [0, 0, 1, 1], [], []>} : vector<1x96xf32>, vector<96x96xf32>, vector<1x96xf32> -> vector<1x96xf32>
    %c0_10 = arith.constant 0 : index
    %c0_11 = arith.constant 0 : index
    %10 = vector.load %arg5[%c0_10, %c0_11] : memref<1x96xf32, #tpu.memory_space<vmem>>, vector<1x96xf32>
    %11 = arith.addf %9, %10 : vector<1x96xf32>
    %cst_12 = arith.constant 0.000000e+00 : f32
    %12 = vector.broadcast %cst_12 : f32 to vector<1x96xf32>
    %13 = arith.maximumf %11, %12 : vector<1x96xf32>
    %c0_13 = arith.constant 0 : index
    %c0_14 = arith.constant 0 : index
    %14 = vector.load %arg6[%c0_13, %c0_14] : memref<96x80xf32, #tpu.memory_space<vmem>>, vector<96x80xf32>
    %cst_15 = arith.constant dense<0.000000e+00> : vector<1x80xf32>
    %15 = tpu.matmul %13, %14, %cst_15 {dimension_numbers = #tpu.dot_dimension_numbers<[1], [0], [0], [1], [0, 0, 1, 1], [], []>} : vector<1x96xf32>, vector<96x80xf32>, vector<1x80xf32> -> vector<1x80xf32>
    %c0_16 = arith.constant 0 : index
    %c0_17 = arith.constant 0 : index
    %16 = vector.load %arg7[%c0_16, %c0_17] : memref<1x80xf32, #tpu.memory_space<vmem>>, vector<1x80xf32>
    %17 = arith.addf %15, %16 : vector<1x80xf32>
    %18 = vector.extract_strided_slice %17 {offsets = [0, 0], sizes = [1, 8], strides = [1, 1]} : vector<1x80xf32> to vector<1x8xf32>
    %c0_18 = arith.constant 0 : index
    %c0_19 = arith.constant 0 : index
    %c0_20 = arith.constant 0 : index
    %19 = vector.load %arg8[%c0_18, %c0_19, %c0_20] : memref<1x1x8xf32, #tpu.memory_space<vmem>>, vector<1x1x8xf32>
    %20 = vector.shape_cast %19 : vector<1x1x8xf32> to vector<1x8xf32>
    %21 = vector.shape_cast %18 : vector<1x8xf32> to vector<1x1x8xf32>
    tpu.vector_store %arg8[%c0_18, %c0_19, %c0_20], %21 {strides = array<i32>} : memref<1x1x8xf32, #tpu.memory_space<vmem>>, vector<1x1x8xf32>,
    %22 = vector.extract_strided_slice %17 {offsets = [0, 8], sizes = [1, 8], strides = [1, 1]} : vector<1x80xf32> to vector<1x8xf32>
    %23 = math.exp %22 : vector<1x8xf32>
    %24 = tpu.iota {dimensions = array<i32: 0>} : vector<8x8xi32>
    %25 = tpu.iota {dimensions = array<i32: 1>} : vector<8x8xi32>
    %cst_21 = arith.constant 0.000000e+00 : f32
    %26 = vector.broadcast %cst_21 : f32 to vector<8x8xf32>
    %27 = vector.extract_strided_slice %17 {offsets = [0, 16], sizes = [1, 8], strides = [1, 1]} : vector<1x80xf32> to vector<1x8xf32>
    %c0_i32 = arith.constant 0 : i32
    %28 = vector.broadcast %c0_i32 : i32 to vector<8x8xi32>
    %29 = arith.cmpi eq, %24, %28 : vector<8x8xi32>
    %cst_22 = arith.constant 0.000000e+00 : f32
    %30 = vector.shape_cast %27 : vector<1x8xf32> to vector<1x8xf32>
    %31 = vector.broadcast %30 : vector<1x8xf32> to vector<8x8xf32>
    %32 = vector.broadcast %cst_22 : f32 to vector<8x8xf32>
    %33 = arith.select %29, %31, %32 : vector<8x8xi1>, vector<8x8xf32>
    %34 = arith.addf %26, %33 : vector<8x8xf32>
    %35 = vector.extract_strided_slice %17 {offsets = [0, 24], sizes = [1, 8], strides = [1, 1]} : vector<1x80xf32> to vector<1x8xf32>
    %c1_i32 = arith.constant 1 : i32
    %36 = vector.broadcast %c1_i32 : i32 to vector<8x8xi32>
    %37 = arith.cmpi eq, %24, %36 : vector<8x8xi32>
    %cst_23 = arith.constant 0.000000e+00 : f32
    %38 = vector.shape_cast %35 : vector<1x8xf32> to vector<1x8xf32>
    %39 = vector.broadcast %38 : vector<1x8xf32> to vector<8x8xf32>
    %40 = vector.broadcast %cst_23 : f32 to vector<8x8xf32>
    %41 = arith.select %37, %39, %40 : vector<8x8xi1>, vector<8x8xf32>
    %42 = arith.addf %34, %41 : vector<8x8xf32>
    %43 = vector.extract_strided_slice %17 {offsets = [0, 32], sizes = [1, 8], strides = [1, 1]} : vector<1x80xf32> to vector<1x8xf32>
    %c2_i32 = arith.constant 2 : i32
    %44 = vector.broadcast %c2_i32 : i32 to vector<8x8xi32>
    %45 = arith.cmpi eq, %24, %44 : vector<8x8xi32>
    %cst_24 = arith.constant 0.000000e+00 : f32
    %46 = vector.shape_cast %43 : vector<1x8xf32> to vector<1x8xf32>
    %47 = vector.broadcast %46 : vector<1x8xf32> to vector<8x8xf32>
    %48 = vector.broadcast %cst_24 : f32 to vector<8x8xf32>
    %49 = arith.select %45, %47, %48 : vector<8x8xi1>, vector<8x8xf32>
    %50 = arith.addf %42, %49 : vector<8x8xf32>
    %51 = vector.extract_strided_slice %17 {offsets = [0, 40], sizes = [1, 8], strides = [1, 1]} : vector<1x80xf32> to vector<1x8xf32>
    %c3_i32 = arith.constant 3 : i32
    %52 = vector.broadcast %c3_i32 : i32 to vector<8x8xi32>
    %53 = arith.cmpi eq, %24, %52 : vector<8x8xi32>
    %cst_25 = arith.constant 0.000000e+00 : f32
    %54 = vector.shape_cast %51 : vector<1x8xf32> to vector<1x8xf32>
    %55 = vector.broadcast %54 : vector<1x8xf32> to vector<8x8xf32>
    %56 = vector.broadcast %cst_25 : f32 to vector<8x8xf32>
    %57 = arith.select %53, %55, %56 : vector<8x8xi1>, vector<8x8xf32>
    %58 = arith.addf %50, %57 : vector<8x8xf32>
    %59 = vector.extract_strided_slice %17 {offsets = [0, 48], sizes = [1, 8], strides = [1, 1]} : vector<1x80xf32> to vector<1x8xf32>
    %c4_i32 = arith.constant 4 : i32
    %60 = vector.broadcast %c4_i32 : i32 to vector<8x8xi32>
    %61 = arith.cmpi eq, %24, %60 : vector<8x8xi32>
    %cst_26 = arith.constant 0.000000e+00 : f32
    %62 = vector.shape_cast %59 : vector<1x8xf32> to vector<1x8xf32>
    %63 = vector.broadcast %62 : vector<1x8xf32> to vector<8x8xf32>
    %64 = vector.broadcast %cst_26 : f32 to vector<8x8xf32>
    %65 = arith.select %61, %63, %64 : vector<8x8xi1>, vector<8x8xf32>
    %66 = arith.addf %58, %65 : vector<8x8xf32>
    %67 = vector.extract_strided_slice %17 {offsets = [0, 56], sizes = [1, 8], strides = [1, 1]} : vector<1x80xf32> to vector<1x8xf32>
    %c5_i32 = arith.constant 5 : i32
    %68 = vector.broadcast %c5_i32 : i32 to vector<8x8xi32>
    %69 = arith.cmpi eq, %24, %68 : vector<8x8xi32>
    %cst_27 = arith.constant 0.000000e+00 : f32
    %70 = vector.shape_cast %67 : vector<1x8xf32> to vector<1x8xf32>
    %71 = vector.broadcast %70 : vector<1x8xf32> to vector<8x8xf32>
    %72 = vector.broadcast %cst_27 : f32 to vector<8x8xf32>
    %73 = arith.select %69, %71, %72 : vector<8x8xi1>, vector<8x8xf32>
    %74 = arith.addf %66, %73 : vector<8x8xf32>
    %75 = vector.extract_strided_slice %17 {offsets = [0, 64], sizes = [1, 8], strides = [1, 1]} : vector<1x80xf32> to vector<1x8xf32>
    %c6_i32 = arith.constant 6 : i32
    %76 = vector.broadcast %c6_i32 : i32 to vector<8x8xi32>
    %77 = arith.cmpi eq, %24, %76 : vector<8x8xi32>
    %cst_28 = arith.constant 0.000000e+00 : f32
    %78 = vector.shape_cast %75 : vector<1x8xf32> to vector<1x8xf32>
    %79 = vector.broadcast %78 : vector<1x8xf32> to vector<8x8xf32>
    %80 = vector.broadcast %cst_28 : f32 to vector<8x8xf32>
    %81 = arith.select %77, %79, %80 : vector<8x8xi1>, vector<8x8xf32>
    %82 = arith.addf %74, %81 : vector<8x8xf32>
    %83 = vector.extract_strided_slice %17 {offsets = [0, 72], sizes = [1, 8], strides = [1, 1]} : vector<1x80xf32> to vector<1x8xf32>
    %c7_i32 = arith.constant 7 : i32
    %84 = vector.broadcast %c7_i32 : i32 to vector<8x8xi32>
    %85 = arith.cmpi eq, %24, %84 : vector<8x8xi32>
    %cst_29 = arith.constant 0.000000e+00 : f32
    %86 = vector.shape_cast %83 : vector<1x8xf32> to vector<1x8xf32>
    %87 = vector.broadcast %86 : vector<1x8xf32> to vector<8x8xf32>
    %88 = vector.broadcast %cst_29 : f32 to vector<8x8xf32>
    %89 = arith.select %85, %87, %88 : vector<8x8xi1>, vector<8x8xf32>
    %90 = arith.addf %82, %89 : vector<8x8xf32>
    %91 = arith.cmpi slt, %25, %24 : vector<8x8xi32>
    %cst_30 = arith.constant 0.000000e+00 : f32
    %92 = vector.broadcast %cst_30 : f32 to vector<8x8xf32>
    %93 = arith.select %91, %90, %92 : vector<8x8xi1>, vector<8x8xf32>
    %94 = arith.cmpi eq, %25, %24 : vector<8x8xi32>
    %cst_31 = arith.constant 0.000000e+00 : f32
    %95 = vector.shape_cast %23 : vector<1x8xf32> to vector<1x8xf32>
    %96 = vector.broadcast %95 : vector<1x8xf32> to vector<8x8xf32>
    %97 = vector.broadcast %cst_31 : f32 to vector<8x8xf32>
    %98 = arith.select %94, %96, %97 : vector<8x8xi1>, vector<8x8xf32>
    %99 = arith.addf %93, %98 : vector<8x8xf32>
    %c0_32 = arith.constant 0 : index
    %c0_33 = arith.constant 0 : index
    %c0_34 = arith.constant 0 : index
    %100 = vector.load %arg9[%c0_32, %c0_33, %c0_34] : memref<1x8x8xf32, #tpu.memory_space<vmem>>, vector<1x8x8xf32>
    %101 = vector.shape_cast %100 : vector<1x8x8xf32> to vector<8x8xf32>
    %102 = vector.shape_cast %99 : vector<8x8xf32> to vector<1x8x8xf32>
    tpu.vector_store %arg9[%c0_32, %c0_33, %c0_34], %102 {strides = array<i32>} : memref<1x8x8xf32, #tpu.memory_space<vmem>>, vector<1x8x8xf32>,
    %cst_35 = arith.constant dense<0.000000e+00> : vector<8x8xf32>
    %103 = tpu.matmul %99, %99, %cst_35 {dimension_numbers = #tpu.dot_dimension_numbers<[1], [1], [0], [0], [0, 0, 1, 0], [], []>} : vector<8x8xf32>, vector<8x8xf32>, vector<8x8xf32> -> vector<8x8xf32>
    %c0_36 = arith.constant 0 : index
    %c0_37 = arith.constant 0 : index
    %c0_38 = arith.constant 0 : index
    %104 = vector.load %arg10[%c0_36, %c0_37, %c0_38] : memref<1x8x8xf32, #tpu.memory_space<vmem>>, vector<1x8x8xf32>
    %105 = vector.shape_cast %104 : vector<1x8x8xf32> to vector<8x8xf32>
    %106 = vector.shape_cast %103 : vector<8x8xf32> to vector<1x8x8xf32>
    tpu.vector_store %arg10[%c0_36, %c0_37, %c0_38], %106 {strides = array<i32>} : memref<1x8x8xf32, #tpu.memory_space<vmem>>, vector<1x8x8xf32>,
    return
  }
  func.func @transform_0(%arg0: i32) -> (i32, i32, i32) {
    %c0_i32 = arith.constant 0 : i32
    %c0_i32_0 = arith.constant 0 : i32
    %c0_i32_1 = arith.constant 0 : i32
    return %arg0, %c0_i32, %c0_i32_0 : i32, i32, i32
  }
  func.func @transform_1(%arg0: i32) -> (i32, i32) {
    %c0_i32 = arith.constant 0 : i32
    %c0_i32_0 = arith.constant 0 : i32
    %c0_i32_1 = arith.constant 0 : i32
    return %c0_i32, %c0_i32_0 : i32, i32
  }
  func.func @transform_2(%arg0: i32) -> (i32, i32) {
    %c0_i32 = arith.constant 0 : i32
    %c0_i32_0 = arith.constant 0 : i32
    %c0_i32_1 = arith.constant 0 : i32
    return %c0_i32, %c0_i32_0 : i32, i32
  }
  func.func @transform_3(%arg0: i32) -> (i32, i32) {
    %c0_i32 = arith.constant 0 : i32
    %c0_i32_0 = arith.constant 0 : i32
    %c0_i32_1 = arith.constant 0 : i32
    return %c0_i32, %c0_i32_0 : i32, i32
  }
  func.func @transform_4(%arg0: i32) -> (i32, i32) {
    %c0_i32 = arith.constant 0 : i32
    %c0_i32_0 = arith.constant 0 : i32
    %c0_i32_1 = arith.constant 0 : i32
    return %c0_i32, %c0_i32_0 : i32, i32
  }
  func.func @transform_5(%arg0: i32) -> (i32, i32) {
    %c0_i32 = arith.constant 0 : i32
    %c0_i32_0 = arith.constant 0 : i32
    %c0_i32_1 = arith.constant 0 : i32
    return %c0_i32, %c0_i32_0 : i32, i32
  }
  func.func @transform_6(%arg0: i32) -> (i32, i32) {
    %c0_i32 = arith.constant 0 : i32
    %c0_i32_0 = arith.constant 0 : i32
    %c0_i32_1 = arith.constant 0 : i32
    return %c0_i32, %c0_i32_0 : i32, i32
  }
  func.func @transform_7(%arg0: i32) -> (i32, i32, i32) {
    %c0_i32 = arith.constant 0 : i32
    %c0_i32_0 = arith.constant 0 : i32
    %c0_i32_1 = arith.constant 0 : i32
    return %arg0, %c0_i32, %c0_i32_0 : i32, i32, i32
  }
  func.func @transform_8(%arg0: i32) -> (i32, i32, i32) {
    %c0_i32 = arith.constant 0 : i32
    %c0_i32_0 = arith.constant 0 : i32
    %c0_i32_1 = arith.constant 0 : i32
    return %arg0, %c0_i32, %c0_i32_0 : i32, i32, i32
  }
  func.func @transform_9(%arg0: i32) -> (i32, i32, i32) {
    %c0_i32 = arith.constant 0 : i32
    %c0_i32_0 = arith.constant 0 : i32
    %c0_i32_1 = arith.constant 0 : i32
    return %arg0, %c0_i32, %c0_i32_0 : i32, i32, i32
  }
}

</mosaic_0001>

<bundles_post_ra>
// kernel: tpu_custom_call.1
= control target key start
LH: loop header
LB: loop body
LE: loop exit
PB: predicated region body
PF: predicated region fallthrough
CT: control target
= control target key end

     0   :  { %s1633_s0 = inlined_call_operand.vmem [shape: f32[2,1,32], index: 0, kind: input, shape index: {}]   ;;  %s1634_s1 = inlined_call_operand.vmem [shape: f32[32,96], index: 1, kind: input, shape index: {}]   ;;  %s1635_s2 = inlined_call_operand.vmem [shape: f32[1,96], index: 2, kind: input, shape index: {}]   ;;  %s1636_s3 = inlined_call_operand.vmem [shape: f32[96,96], index: 3, kind: input, shape index: {}]   ;;  %s1637_s4 = inlined_call_operand.vmem [shape: f32[1,96], index: 4, kind: input, shape index: {}]   ;;  %s1638_s5 = inlined_call_operand.vmem [shape: f32[96,80], index: 5, kind: input, shape index: {}]   ;;  %s1639_s6 = inlined_call_operand.vmem [shape: f32[1,80], index: 6, kind: input, shape index: {}]   ;;  %s1640_s7 = inlined_call_operand.hbm [shape: f32[2,1,8], index: 7, kind: output, shape index: {0}]   ;;  %s1641_s8 = inlined_call_operand.hbm [shape: f32[2,8,8], index: 8, kind: output, shape index: {1}]   ;;  %s1642_s9 = inlined_call_operand.hbm [shape: f32[2,8,8], index: 9, kind: output, shape index: {2}]  }
   0x1   :  { %1647 = sst [smem:[#allocation9_spill]] %s1633_s0 }
   0x2   :  { %1648 = sst [smem:[#allocation10_spill]] %s1634_s1 }
   0x3   :  { %1649 = sst [smem:[#allocation11_spill]] %s1635_s2 }
   0x4   :  { %15 = vsyncpa [#allocation3], 0 }
   0x5   :  { %17 = vsyncpa [#allocation3 + $0x1], 0 }
   0x6   :  { %18 = vsyncpa [#allocation5], 0 }
   0x7   :  { %20 = vsyncpa [#allocation5 + $0x1], 0  ;;  %s1327_s30 = smov 0   ;;  %s1329_s10 = smov 0  }
   0x8   :  { %s1331_s11 = smov 0   ;;  %s1333_s12 = smov 0  }
   0x9 LB: > { %s1348_s13 = sadd.s32 4294967295, %s1262_s12   ;;  %s1643_s14 = sadd.s32 4294967294, %s1262_s12   ;;  %s1262_s12 = sphi %s1333_s12, %s1662_s12   ;;  %s1258_s11 = sphi %s1331_s11, %s1661_s11   ;;  %s1254_s10 = sphi %s1329_s10, %s1660_s10   ;;  %s1250_s30 = sphi %s1327_s30, %s1659_s30  }
   0xa   : > { %s1352_s15 = sadd.s32 1, %s1262_s12   ;;  %s185_s16 = sadd.s32 1, %s1258_s11 }
   0xb   : > { %s182_s17 = ssub.s32 %s1262_s12, %s1352_s15  ;;  %p195_p0 = scmp.ne.s32.totalorder %s1258_s11, %s1254_s10 }
   0xc   : > { %p183_p1 = scmp.eq.s32.totalorder %s182_s17, 0  ;;  %p196_p2 = scmp.eq.s32.totalorder %s1348_s13, 1 }
   0xd   : > { %p201_p3 = scmp.ne.s32.totalorder %s1254_s10, %s1250_s30  ;;  %p202_p4 = scmp.eq.s32.totalorder %s1643_s14, 1 }
   0xe   : > { %s1365_s18 = scalar_select %p183_p1, %s1258_s11, %s185_s16  }
   0xf   : > { %p1367_p5 = por %p196_p2, %p195_p0  ;;  %p1371_p6 = por %p202_p4, %p201_p3 }
  0x10   : > { %p919_p7 = scmp.ge.s32.totalorder %s1262_s12, 1  ;;  %p296_p8 = scmp.lt.s32.totalorder %s1262_s12, 3 }
  0x12   : > { %p297_p9 = pnand %p919_p7, %p296_p8 }
  0x13   : > { %s1652_s1 = sld [smem:[#allocation10_spill]] (!%p297_p9)  ;;  %v1264_v3 = vmov (!%p297_p9), 0.0|0.0   ;;  %vm1265_vm0 = vmmov (!%p297_p9), 0   ;;  %v1266_v6 = vmov (!%p297_p9), 0.0   ;;  %p339_p10 = scmp.lt.s32.totalorder (!%p297_p9), %s1348_s13, 1  ;;  %v423_v7 = vld [vmem:[%s1636_s3] sm:$0xff] (!%p297_p9)  ;;  %v601_v55 = vlaneseq (!%p297_p9) }
  0x14   : > { %300 = sbr.rel (%p297_p9) target bundleno = 1162 (0x48a), region = 48  ;;  %1037 = vmatprep.subr.bf16.mxu0 (!%p297_p9), %v1264_v3  ;;  %975 = vmatprep.mubr.msk.f32.mxu0 (!%p297_p9), %vm1265_vm0, %v1266_v6  ;;  %v424_v8 = vld [vmem:[%s1636_s3 + $0x8] sm:$0xff] (!%p297_p9)  ;;  %v425_v10 = vld [vmem:[%s1636_s3 + $0x10] sm:$0xff] (!%p297_p9)  ;;  %v426_v11 = vld [vmem:[%s1636_s3 + $0x18] sm:$0xff] (!%p297_p9)  ;;  %s1653_s0 = sld [smem:[#allocation9_spill]] (!%p297_p9)  ;;  %vm348_vm1 = vcmask (!%p297_p9), 261120  }
  0x15   : > { %1043 = vmatprep.subr.bf16.mxu1 (!%p297_p9), %v1264_v3  ;;  %v1044_v9 = vpack.c.bf16 (!%p297_p9), %v424_v8, %v423_v7  ;;  %1002 = vmatprep.mubr.msk.f32.mxu1 (!%p297_p9), %vm1265_vm0, %v1266_v6  ;;  %v1047_v13 = vpack.c.bf16 (!%p297_p9), %v426_v11, %v425_v10  ;;  %v427_v14 = vld [vmem:[%s1636_s3 + $0x20] sm:$0xff] (!%p297_p9)  ;;  %v428_v15 = vld [vmem:[%s1636_s3 + $0x28] sm:$0xff] (!%p297_p9)  ;;  %v429_v18 = vld [vmem:[%s1636_s3 + $0x30] sm:$0xff] (!%p297_p9)  ;;  %s1654_s2 = sld [smem:[#allocation11_spill]] (!%p297_p9)  ;;  %vm436_vm2 = vcmask (!%p297_p9), 785408   ;;  %v1495_v56 = vshrl.u32 (!%p297_p9), %v601_v55, 7 }
  0x16   : > { %v1050_v17 = vpack.c.bf16 (!%p297_p9), %v428_v15, %v427_v14  ;;  %v430_v19 = vld [vmem:[%s1636_s3 + $0x38] sm:$0xff] (!%p297_p9)  ;;  %v431_v21 = vld [vmem:[%s1636_s3 + $0x40] sm:$0xff] (!%p297_p9)  ;;  %v432_v22 = vld [vmem:[%s1636_s3 + $0x48] sm:$0xff] (!%p297_p9)  ;;  %s1498_s16 = sand.u32 (!%p297_p9), 1, %s1254_s10   ;;  %vm597_vm3 = vcmask (!%p297_p9), 57344   ;;  %s1267_s23 = smov (!%p297_p9), 104  }
  0x17   : > { %1045 = vmatpush3.bf16.msra.mxu1 (!%p297_p9), %v1044_v9  ;;  %v1053_v20 = vpack.c.bf16 (!%p297_p9), %v430_v19, %v429_v18  ;;  %v1056_v23 = vpack.c.bf16 (!%p297_p9), %v432_v22, %v431_v21  ;;  %v433_v24 = vld [vmem:[%s1636_s3 + $0x50] sm:$0xff] (!%p297_p9)  ;;  %v434_v25 = vld [vmem:[%s1636_s3 + $0x58] sm:$0xff] (!%p297_p9)  ;;  %v511_v27 = vld [vmem:[%s1638_s5] sm:$0xff] (!%p297_p9)  ;;  %v608_v58 = vsub.s32 (!%p297_p9), 0, %v1495_v56  ;;  %vm626_vm4 = vcmp.eq.s32.totalorder (!%p297_p9), %v1495_v56, 3  ;;  %s1645_s22 = scalar_lea.vmem (!%p297_p9), [#allocation2], %s1498_s16 }
  0x18   : > { %1046 = vmatprep.subr.bf16.mxu1 (!%p297_p9), %v1264_v3  ;;  %v1059_v26 = vpack.c.bf16 (!%p297_p9), %v434_v25, %v433_v24  ;;  %v512_v28 = vld [vmem:[%s1638_s5 + $0x8] sm:$0xff] (!%p297_p9)  ;;  %v513_v29 = vld [vmem:[%s1638_s5 + $0x10] sm:$0xff] (!%p297_p9)  ;;  %v514_v31 = vld [vmem:[%s1638_s5 + $0x18] sm:$0xff] (!%p297_p9)  ;;  %vm612_vm5 = vcmp.eq.s32.totalorder (!%p297_p9), %v1495_v56, 1  ;;  %s1268_s24 = smov (!%p297_p9), 120   ;;  %vm633_vm6 = vcmp.eq.s32.totalorder (!%p297_p9), %v1495_v56, 4 }
  0x19   : > { %v343_v0 = vld [vmem:[%s1652_s1] sm:$0xff] (!%p297_p9)  ;;  %v344_v1 = vld [vmem:[%s1652_s1 + $0x8] sm:$0xff] (!%p297_p9)  ;;  %v345_v2 = vld [vmem:[%s1652_s1 + $0x10] sm:$0xff] (!%p297_p9)  ;;  %v1062_v30 = vpack.c.bf16 (!%p297_p9), %v512_v28, %v511_v27  ;;  %v1065_v32 = vpack.c.bf16 (!%p297_p9), %v514_v31, %v513_v29  ;;  %vm619_vm7 = vcmp.eq.s32.totalorder (!%p297_p9), %v1495_v56, 2  ;;  %s1269_s25 = smov (!%p297_p9), 96   ;;  %vm647_vm8 = vcmp.eq.s32.totalorder (!%p297_p9), %v1495_v56, 6 }
  0x1a   : > { %v1038_v4 = vpack.c.bf16 (!%p297_p9), %v344_v1, %v343_v0  ;;  %v346_v5 = vld [vmem:[%s1652_s1 + $0x18] sm:$0xff] (!%p297_p9)  ;;  %v515_v33 = vld [vmem:[%s1638_s5 + $0x20] sm:$0xff] (!%p297_p9)  ;;  %v516_v34 = vld [vmem:[%s1638_s5 + $0x28] sm:$0xff] (!%p297_p9)  ;;  %vm640_vm9 = vcmp.eq.s32.totalorder (!%p297_p9), %v1495_v56, 5  ;;  %s1271_s27 = smov (!%p297_p9), 80   ;;  %s1272_s28 = smov (!%p297_p9), 88  }
  0x1b   : > { %v1041_v12 = vpack.c.bf16 %v346_v5, %v345_v2  ;;  %s340_s26 = scalar_select %p339_p10, %s1348_s13, 1  ;;  %1048 = vmatpush3.bf16.msra.mxu1 %v1047_v13  ;;  %v1068_v35 = vpack.c.bf16 %v516_v34, %v515_v33  ;;  %v517_v36 = vld [vmem:[%s1638_s5 + $0x30] sm:$0xff]  ;;  %v518_v37 = vld [vmem:[%s1638_s5 + $0x38] sm:$0xff]  ;;  %v519_v39 = vld [vmem:[%s1638_s5 + $0x40] sm:$0xff]  ;;  %vm654_vm10 = vcmp.eq.s32.totalorder %v1495_v56, 7  ;;  %vm605_vm11 = vcmp.eq.s32.totalorder %v1495_v56, 0 }
  0x1c   : > { %1039 = vmatpush3.bf16.msra.mxu0 %v1038_v4  ;;  %1049 = vmatprep.subr.bf16.mxu1 %v1264_v3  ;;  %v1071_v38 = vpack.c.bf16 %v518_v37, %v517_v36  ;;  %v520_v40 = vld [vmem:[%s1638_s5 + $0x48] sm:$0xff]  ;;  %v347_v42 = vld [vmem:[%s1654_s2] sm:$0x1]  ;;  %v521_v47 = vld [vmem:[%s1638_s5 + $0x50] sm:$0xff]  ;;  %v604_v24 = vand.u32 127, %v601_v55  ;;  %s1644_s17 = sshll.u32 %s1498_s16, 3 }
  0x1d   : > { %1040 = vmatprep.subr.bf16.mxu0 %v1264_v3  ;;  %s341_s29 = scalar_lea.vmem %s1653_s0, %s340_s26  ;;  %v1074_v41 = vpack.c.bf16 %v520_v40, %v519_v39  ;;  %v522_v48 = vld [vmem:[%s1638_s5 + $0x58] sm:$0xff]  ;;  %v435_v50 = vld [vmem:[%s1637_s4] sm:$0x1]  ;;  %s1270_s26 = smov 112   ;;  %vm678_vm14 = vcmask 64512  }
  0x1e   : > { %v342_v16 = vld [vmem:[%s341_s29] sm:$0x1]  ;;  %v1077_v49 = vpack.c.bf16 %v522_v48, %v521_v47  ;;  %s1273_s29 = smov 72   ;;  %vm667_vm12 = vcmp.eq.s32.totalorder %v604_v24, %v1495_v56  ;;  %vm661_vm13 = vcmp.lt.s32.totalorder %v604_v24, %v1495_v56  ;;  %s331_s21 = scalar_lea.vmem [#allocation4], %s1644_s17 }
  0x1f   : > { %1051 = vmatpush3.bf16.msra.mxu1 %v1050_v17  ;;  %v523_v57 = vld [vmem:[%s1639_s6] sm:$0x1]  ;;  %s1274_s17 = smov [#allocation4]  }
  0x20   : > { %1042 = vmatpush3.bf16.msra.mxu0 %v1041_v12  ;;  %1052 = vmatprep.subr.bf16.mxu1 %v1264_v3 }
  0x21   : > { %1061 = vmatprep.subr.bf16.mxu0 %v1264_v3 }
  0x23   : > { %976 = vmatmul.mubr.msk.f32.vlgmr.msra.gmra.mrb[0].mxu0 %vm348_vm1, %v342_v16  ;;  %1054 = vmatpush3.bf16.msra.mxu1 %v1053_v20 }
  0x24   : > { %1029 = vmatprep.mubr.msk.f32.mxu0 %vm1265_vm0, %v1266_v6  ;;  %1055 = vmatprep.subr.bf16.mxu1 %v1264_v3 }
  0x25   : > { %1063 = vmatpush3.bf16.msra.mxu0 %v1062_v30 }
  0x26   : > { %1064 = vmatprep.subr.bf16.mxu0 %v1264_v3 }
  0x27   : > { %1057 = vmatpush3.bf16.msra.mxu1 %v1056_v23 }
  0x28   : > { %1058 = vmatprep.subr.bf16.mxu1 %v1264_v3 }
  0x29   : > { %1066 = vmatpush3.bf16.msra.mxu0 %v1065_v32 }
  0x2a   : > { %1067 = vmatprep.subr.bf16.mxu0 %v1264_v3 }
  0x2b   : > { %1060 = vmatpush3.bf16.msra.mxu1 %v1059_v26 }
  0x2c   : > { %1032 = vmatprep.subr.mxu1 %v1266_v6 }
  0x2d   : > { %1069 = vmatpush3.bf16.msra.mxu0 %v1068_v35 }
  0x2e   : > { %1070 = vmatprep.subr.bf16.mxu0 %v1264_v3 }
  0x31   : > { %1072 = vmatpush3.bf16.msra.mxu0 %v1071_v38 }
  0x32   : > { %1073 = vmatprep.subr.bf16.mxu0 %v1264_v3 }
  0x35   : > { %1075 = vmatpush3.bf16.msra.mxu0 %v1074_v41 }
  0x36   : > { %1076 = vmatprep.subr.bf16.mxu0 %v1264_v3 }
  0x39   : > { %1078 = vmatpush3.bf16.msra.mxu0 %v1077_v49 }
  0xf6   : > { %v418_v43 = vpop.f32.mrb[0].mxu0 }
  0xf7   : > { %v419_v44 = vadd.f32 %v418_v43, %v347_v42  ;;  %v977_v45 = vpop.f32.mrb[1].mxu0 }
  0xf9   : > { %v422_v46 = vmax.f32 %v419_v44, 0.0 }
  0xfb   : > { %1003 = vmatmul.mubr.msk.f32.vlgmr.msra.gmra.mrb[0].mxu1 %vm436_vm2, %v422_v46 }
  0xfc   : > { %1034 = vmatprep.mubr.msk.f32.mxu1 %vm1265_vm0, %v1266_v6 }
 0x1ce   : > { %v506_v51 = vpop.f32.mrb[0].mxu1 }
 0x1cf   : > { %v507_v52 = vadd.f32 %v506_v51, %v435_v50  ;;  %v1004_v53 = vpop.f32.mrb[1].mxu1 }
 0x1d1   : > { %v510_v54 = vmax.f32 %v507_v52, 0.0 }
 0x1d3   : > { %1030 = vmatmul.mubr.msk.f32.vlgmr.msra.gmra.mrb[2].mxu0 %vm436_vm2, %v510_v54 }
 0x2a6   : > { %v593_v59 = vpop.f32.mrb[2].mxu0 }
 0x2a7   : > { %v594_v60 = vadd.f32 %v593_v59, %v523_v57  ;;  %v1031_v61 = vpop.f32.mrb[3].mxu0 }
 0x2a9   : > { %v599_v62 = vmul.f32 1.442695, %v594_v60  ;;  %v609_v63 = vrot.slane %v594_v60, %v608_v58  ;;  %598 = vst.msk [vmem:[%s1645_s22] sm:$0x1] %vm597_vm3, %v594_v60  ;;  %s1144_s22 = sshll.u32 %s1274_s17, 4  ;;  %s1145_s22 = int_to_ptr.vmem [resolvable:$false] %s1144_s22 }
 0x2aa   : > { %s1146_s0 = scalar_lea.vmem %s1145_s22, 256 }
 0x2ab   : > { %v627_v0 = vsel %vm626_vm4, %v609_v63, 0.0  ;;  %v613_v1 = vsel %vm612_vm5, %v609_v63, 0.0  ;;  %1138 = vpow2.f32 %v599_v62  ;;  %v634_v2 = vsel %vm633_vm6, %v609_v63, 0.0 }
 0x2ac   : > { %629 = vrot.lane.b32.xlu1 %v627_v0, %s1267_s23  ;;  %615 = vrot.lane.b32.xlu0 %v613_v1, %s1268_s24  ;;  %v620_v3 = vsel %vm619_vm7, %v609_v63, 0.0  ;;  %v648_v4 = vsel %vm647_vm8, %v609_v63, 0.0  ;;  %v641_v5 = vsel %vm640_vm9, %v609_v63, 0.0  ;;  %v655_v7 = vsel %vm654_vm10, %v609_v63, 0.0  ;;  %s758_s23 = sand.u32 1, %s1348_s13  }
 0x2ad   : > { %v610_v11 = vsel %vm605_vm11, %v609_v63, 0.0 }
 0x2b0   : > { %636 = vrot.lane.b32.xlu1 %v634_v2, %s1269_s25  ;;  %622 = vrot.lane.b32.xlu0 %v620_v3, %s1270_s26  ;;  %s790_s25 = sshll.u32 %s331_s21, 4  ;;  %s791_s25 = int_to_ptr.vmem [resolvable:$true] %s790_s25 }
 0x2b1   : > { %s1140_s14 = scalar_lea.vmem %s791_s25, 128  ;;  %p1147_p0 = scmp.lt.s32.totalorder %s791_s25, %s1145_s22 }
 0x2b2   : > { %p1141_p11 = scmp.ne.s32.totalorder %s791_s25, %s1140_s14  ;;  %p1148_p1 = scmp.lt.s32.totalorder %s1146_s0, %s1140_s14 }
 0x2b4   : > { %650 = vrot.lane.b32.xlu1 %v648_v4, %s1271_s27  ;;  %643 = vrot.lane.b32.xlu0 %v641_v5, %s1272_s28  ;;  %p1142_p12 = pnand %p1141_p11, %p1367_p5  ;;  %p1149_p2 = por %p1148_p1, %p1147_p0 }
 0x2b5   : > { %v1139_v6 = vpop.eup %1138 }
 0x2b6   : > { %v671_v8 = vrot.slane %v1139_v6, %v608_v58  ;;  %p1143_p13 = pneg %p1142_p12 }
 0x2b8   : > { %657 = vrot.lane.b32.xlu0 %v655_v7, %s1273_s29  ;;  %s1534_s29 = scalar_lea.sflag [#allocation5], %s758_s23  ;;  %p1150_p3 = pnand %p1149_p2, %p1143_p13 }
 0x2bc   : > { %673 = vrot.lane.b32.xlu0 %v671_v8, %s1268_s24  ;;  %s1646_s24 = sshll.u32 %s1348_s13, 7 }
 0x2bd   : > { %s1532_s28 = scalar_lea.hbm %s1641_s8, %s1646_s24 }
 0x31e   : > { %v630_v9 = vpop.permute.xlu1 %629  ;;  %v616_v10 = vpop.permute.xlu0 %615 }
 0x31f   : > { %v618_v12 = vadd.f32 %v616_v10, %v610_v11 }
 0x322   : > { %v623_v13 = vpop.permute.xlu0 %622  ;;  %v637_v15 = vpop.permute.xlu1 %636 }
 0x323   : > { %v625_v14 = vadd.f32 %v623_v13, %v618_v12 }
 0x325   : > { %v632_v16 = vadd.f32 %v630_v9, %v625_v14 }
 0x326   : > { %v644_v17 = vpop.permute.xlu0 %643  ;;  %v651_v20 = vpop.permute.xlu1 %650 }
 0x327   : > { %v639_v18 = vadd.f32 %v637_v15, %v632_v16 }
 0x329   : > { %v646_v19 = vadd.f32 %v644_v17, %v639_v18 }
 0x32a   : > { %v658_v22 = vpop.permute.xlu0 %657 }
 0x32b   : > { %v653_v21 = vadd.f32 %v651_v20, %v646_v19 }
 0x32d   : > { %v660_v23 = vadd.f32 %v658_v22, %v653_v21 }
 0x32e   : > { %v674_v25 = vpop.permute.xlu0 %673 }
 0x32f   : > { %663 = vrot.lane.b32.xlu1 %v660_v23, %s1270_s26  ;;  %v676_v27 = vsel %vm667_vm12, %v674_v25, 0.0 }
 0x3a1   : > { %v664_v26 = vpop.permute.xlu1 %663 }
 0x3a2   : > { %v666_v28 = vsel %vm661_vm13, %v664_v26, 0.0 }
 0x3a3   : > { %v677_v29 = vadd.f32 %v676_v27, %v666_v28 }
 0x3a5   : > { %1033 = vmatpush3.xpose.msk.msra.mxu1 %vm678_vm14, %v677_v29  ;;  %679 = vst.msk [vmem:[%s331_s21] sm:$0xff] %vm678_vm14, %v677_v29 }
 0x3a8   : > { %1035 = vmatmul.mubr.msk.f32.vlgmr.msra.gmra.mrb[2].mxu1 %vm678_vm14, %v677_v29 }
 0x3a9   : > { %1153 = shalt.err (!%p1150_p3)
}
 0x3aa   : > { %s1154_s21 = scalar_lea.hbm %s1532_s28, 128  ;;  %s1158_s17 = scalar_lea.hbm %s1641_s8, 256 }
 0x3ab   : > { %p1155_p4 = scmp.ne.s32.totalorder %s1532_s28, %s1154_s21  ;;  %p1159_p9 = scmp.lt.u32.totalorder %s1532_s28, %s1641_s8 }
 0x3ac   : > { %p1160_p10 = scmp.lt.u32.totalorder %s1158_s17, %s1154_s21  ;;  %p1162_p12 = scmp.lt.u32.totalorder %s1154_s21, %s1532_s28 }
 0x3ad   : > { %p1156_p7 = pnand %p1155_p4, %p1367_p5 }
 0x3ae   : > { %p1161_p11 = por %p1160_p10, %p1159_p9 }
 0x3af   : > { %p1157_p8 = pneg %p1156_p7 }
 0x3b0   : > { %p1163_p13 = por %p1162_p12, %p1161_p11 }
 0x3b2   : > { %p1164_p0 = pnand %p1163_p13, %p1157_p8 }
 0x3b4   : > { %1167 = shalt.err (!%p1164_p0)
}
 0x3b5   : > { %1080 = dma.vmem_to_hbm [thread:$0]  (%p1367_p5), %s791_s25, 128, %s1532_s28, %s1534_s29  }
 0x3b6   : > { %s929_s0 = sshll.u32 %s1348_s13, 4  ;;  %s1655_s14 = scalar_lea.vmem [#allocation2], %s1498_s16 }
 0x3b7   : > { %s777_s23 = sshll.u32 %s1655_s14, 4  ;;  %s1560_s17 = scalar_lea.hbm %s1640_s7, %s929_s0  ;;  %s778_s23 = int_to_ptr.vmem [resolvable:$true] %s777_s23 }
 0x3b8   : > { %s755_s21 = scalar_lea.sflag [#allocation3], %s1498_s16  ;;  %s1168_s22 = scalar_lea.vmem %s778_s23, 16 }
 0x3b9   : > { %p1169_p1 = scmp.ne.s32.totalorder %s778_s23, %s1168_s22  ;;  %s1275_s24 = smov [#allocation2]  }
 0x3ba   : > { %s1172_s1 = sshll.u32 %s1275_s24, 4  ;;  %s1173_s1 = int_to_ptr.vmem [resolvable:$false] %s1172_s1 }
 0x3bb   : > { %p1170_p2 = pnand %p1169_p1, %p1367_p5  ;;  %s1174_s2 = scalar_lea.vmem %s1173_s1, 32 }
 0x3bc   : > { %p1175_p4 = scmp.lt.s32.totalorder %s778_s23, %s1173_s1  ;;  %p1176_p7 = scmp.lt.s32.totalorder %s1174_s2, %s1168_s22 }
 0x3bd   : > { %p1171_p3 = pneg %p1170_p2 }
 0x3be   : > { %p1177_p8 = por %p1176_p7, %p1175_p4 }
 0x3c0   : > { %p1178_p9 = pnand %p1177_p8, %p1171_p3 }
 0x3c2   : > { %1181 = shalt.err (!%p1178_p9)
}
 0x3c3   : > { %s1182_s25 = scalar_lea.hbm %s1560_s17, 16  ;;  %s1186_s24 = scalar_lea.hbm %s1640_s7, 32 }
 0x3c4   : > { %p1183_p10 = scmp.ne.s32.totalorder %s1560_s17, %s1182_s25  ;;  %p1187_p13 = scmp.lt.u32.totalorder %s1560_s17, %s1640_s7 }
 0x3c5   : > { %p1188_p0 = scmp.lt.u32.totalorder %s1186_s24, %s1182_s25  ;;  %p1190_p2 = scmp.lt.u32.totalorder %s1182_s25, %s1560_s17 }
 0x3c6   : > { %p1184_p11 = pnand %p1183_p10, %p1367_p5 }
 0x3c7   : > { %p1189_p1 = por %p1188_p0, %p1187_p13 }
 0x3c8   : > { %p1185_p12 = pneg %p1184_p11 }
 0x3c9   : > { %p1191_p3 = por %p1190_p2, %p1189_p1 }
 0x3cb   : > { %p1192_p4 = pnand %p1191_p3, %p1185_p12 }
 0x3cd   : > { %1195 = shalt.err (!%p1192_p4)
}
 0x3ce   : > { %1079 = dma.vmem_to_hbm [thread:$0]  (%p1367_p5), %s778_s23, 16, %s1560_s17, %s755_s21  }
 0x3cf   : > { %s1656_s2 = sshll.u32 %s1498_s16, 3  ;;  %s1657_s22 = sshll.u32 %s1348_s13, 7 }
 0x3d0   : > { %s338_s26 = scalar_lea.vmem [#allocation6], %s1656_s2  ;;  %s1589_s25 = scalar_lea.hbm %s1642_s9, %s1657_s22 }
 0x3d1   : > { %s803_s27 = sshll.u32 %s338_s26, 4  ;;  %s1276_s16 = smov [#allocation6]   ;;  %s1582_s27 = int_to_ptr.vmem [resolvable:$true] %s803_s27 }
 0x3d2   : > { %s1196_s24 = scalar_lea.vmem %s1582_s27, 128  ;;  %s1200_s23 = sshll.u32 %s1276_s16, 4  ;;  %s1201_s23 = int_to_ptr.vmem [resolvable:$false] %s1200_s23 }
 0x3d3   : > { %p1197_p7 = scmp.ne.s32.totalorder %s1582_s27, %s1196_s24  ;;  %s1202_s13 = scalar_lea.vmem %s1201_s23, 256 }
 0x3d4   : > { %p1203_p10 = scmp.lt.s32.totalorder %s1582_s27, %s1201_s23  ;;  %p1204_p11 = scmp.lt.s32.totalorder %s1202_s13, %s1196_s24 }
 0x3d5   : > { %p1198_p8 = pnand %p1197_p7, %p1367_p5 }
 0x3d6   : > { %p1205_p12 = por %p1204_p11, %p1203_p10 }
 0x3d7   : > { %p1199_p9 = pneg %p1198_p8 }
 0x3d9   : > { %p1206_p13 = pnand %p1205_p12, %p1199_p9 }
 0x47b   : > { %v749_v30 = vpop.f32.mrb[2].mxu1 }
 0x47c   : > { %753 = vst.msk [vmem:[%s338_s26] sm:$0xff] %vm678_vm14, %v749_v30  ;;  %v1036_v31 = vpop.f32.mrb[3].mxu1 }
 0x47d   : > { %1209 = shalt.err (!%p1206_p13)
}
 0x47e   : > { %s1210_s17 = scalar_lea.hbm %s1589_s25, 128  ;;  %s1214_s1 = scalar_lea.hbm %s1642_s9, 256 }
 0x47f   : > { %p1211_p0 = scmp.ne.s32.totalorder %s1589_s25, %s1210_s17  ;;  %p1215_p3 = scmp.lt.u32.totalorder %s1589_s25, %s1642_s9 }
 0x480   : > { %p1216_p4 = scmp.lt.u32.totalorder %s1214_s1, %s1210_s17  ;;  %p1218_p8 = scmp.lt.u32.totalorder %s1210_s17, %s1589_s25 }
 0x481   : > { %p1212_p1 = pnand %p1211_p0, %p1367_p5 }
 0x482   : > { %p1217_p7 = por %p1216_p4, %p1215_p3 }
 0x483   : > { %p1213_p2 = pneg %p1212_p1 }
 0x484   : > { %p1219_p9 = por %p1218_p8, %p1217_p7 }
 0x486   : > { %p1220_p10 = pnand %p1219_p9, %p1213_p2 }
 0x488   : > { %1223 = shalt.err (!%p1220_p10)
}
 0x489   : > { %1081 = dma.vmem_to_hbm [thread:$0]  (%p1367_p5), %s1582_s27, 128, %s1589_s25, %s1534_s29  }
 0x48a PF: > { %p1095_p11 = scmp.ge.s32.totalorder %s1262_s12, 2  ;;  %s815_s22 = sand.u32 1, %s1250_s30  }
 0x48b   : > { %s816_s28 = scalar_lea.sflag [#allocation3], %s815_s22 }
 0x48c   : > { %p1086_p12 = pnand %p1095_p11, %p1371_p6 }
 0x48e   : > { %1241 = dma.done.wait (!%p1086_p12), %s816_s28, 16  }
 0x48f   : > { %1243 = vsyncadd (!%p1086_p12), %s816_s28, 4294967280  ;;  %s1658_s0 = sadd.s32 4294967294, %s1262_s12  }
 0x490   : > { %s823_s24 = sand.u32 1, %s1658_s0  }
 0x491   : > { %s824_s16 = scalar_lea.sflag [#allocation5], %s823_s24 }
 0x492   : > { %1245 = dma.done.wait (!%p1086_p12), %s824_s16, 256  }
 0x493   : > { %1247 = vsyncadd (!%p1086_p12), %s824_s16, 4294967040  ;;  %p23_p5 = scmp.ge.s32.totalorder %s1352_s15, 4   ;;  %s1659_s30 = smov %s1254_s10 }
 0x494   : > { %s1660_s10 = smov %s1258_s11  ;;  %s1661_s11 = smov %s1365_s18 }
 0x495   : > { %s1662_s12 = smov %s1352_s15  ;;  %25 = sbr.rel (!%p23_p5) target bundleno = 9 (0x9), region = 115 }
 0x49c   :  { %838 = vsyncpa [#allocation3], 1 }
 0x49d   :  { %840 = vsyncpa [#allocation3 + $0x1], 1 }
 0x49e   :  { %841 = vsyncpa [#allocation5], 1 }
 0x49f   :  { %843 = vsyncpa [#allocation5 + $0x1], 1 }

</bundles_post_ra>
